<compile_context>
chip_gen: v7x
topology: tpu7x:2x2x1
jax: 0.10.0
libtpu: 0.0.40
codegen_flags: <defaults>
</compile_context>

<pallas_src>
import jax
import jax.numpy as jnp
from jax.experimental import pallas as pl
from jax.experimental.pallas import tpu as pltpu

EPS = 1e-5  # nn.LayerNorm default


def _round_up(n, m):
    return ((n + m - 1) // m) * m


def _mhn_kernel(x_ref, wdb_ref, c_ref, k_ref, o_ref):
    """Fused trunk+LN+heads on one lane-dense batch tile.

    x_ref  : (3, TILE_B) VMEM, batch on lanes (features on sublanes).
    wdb_ref: (4,)  SMEM  -> [wd0, wd1, wd2, bd] folded trunk coefficients.
    c_ref  : (8, 1) VMEM -> per-output-row gain on the normalized scalar t.
    k_ref  : (8, 1) VMEM -> per-output-row constant offset.
    o_ref  : (8, TILE_B) -> head1 rows 0:4, head2 rows 4:8.
    """
    x = x_ref[...]
    # d = 0.5*(h0 - h1) = wd . x + bd   (exact fold of Linear(3,2))
    d = (wdb_ref[0] * x[0:1, :] + wdb_ref[1] * x[1:2, :]
         + wdb_ref[2] * x[2:3, :] + wdb_ref[3])
    # LayerNorm over 2 features: normalized values are +/- d * rsqrt(d^2 + eps)
    t = d * jax.lax.rsqrt(d * d + EPS)
    # Both heads at once: (8,1) x (1,TILE_B) broadcast outer-product + offset.
    o_ref[...] = c_ref[...] * t + k_ref[...]


def multi_head_test_net(x, params):
    """Forward pass of MultiHeadTestNet. x: (B, 3) f32. Returns two (B, 4)."""
    (w1, b1, g, beta, wh1, bh1, wh2, bh2) = params
    B = x.shape[0]

    # ---- host-side O(1) algebra fold (exact, matches LN-over-2-features) ----
    wh = jnp.concatenate([wh1, wh2], axis=0).astype(jnp.float32)   # (8, 2)
    bh = jnp.concatenate([bh1, bh2], axis=0).astype(jnp.float32)   # (8,)
    wd = 0.5 * (w1[0] - w1[1])                                      # (3,)
    bd = 0.5 * (b1[0] - b1[1])                                      # ()
    wdb = jnp.concatenate([wd, bd[None]]).astype(jnp.float32)       # (4,) SMEM
    c = (wh[:, 0] * g[0] - wh[:, 1] * g[1]).reshape(8, 1)           # (8, 1)
    k = (wh[:, 0] * beta[0] + wh[:, 1] * beta[1] + bh).reshape(8, 1)

    # ---- adaptive lane-dense batch tile ----
    # ceil(B/2) keeps >=2 grid steps for v7x's two TensorCores once B > 1024;
    # the 64K cap keeps double-buffered VMEM at ~8 MiB on every generation.
    tile_b = min(65536, max(1024, _round_up(-(-B // 2), 1024)))
    b_pad = _round_up(B, tile_b)

    # Single pad pass (no zeros+scatter double pass); transpose is layout
    # plumbing, not compute.
    x_t = jnp.pad(x.T.astype(jnp.float32), ((0, 0), (0, b_pad - B)))

    vmem = pltpu.MemorySpace.VMEM
    smem = pltpu.MemorySpace.SMEM
    out = pl.pallas_call(
        _mhn_kernel,
        out_shape=jax.ShapeDtypeStruct((8, b_pad), jnp.float32),
        grid=(b_pad // tile_b,),
        in_specs=[
            pl.BlockSpec((3, tile_b), lambda i: (0, i)),  # streamed x tiles
            pl.BlockSpec(memory_space=smem),              # wdb (4,)
            pl.BlockSpec(memory_space=vmem),              # c   (8, 1)
            pl.BlockSpec(memory_space=vmem),              # k   (8, 1)
        ],
        out_specs=pl.BlockSpec((8, tile_b), lambda i: (0, i)),
        compiler_params=pltpu.CompilerParams(
            dimension_semantics=("parallel",),
        ),
    )(x_t, wdb, c, k)

    # Single (8,B)->(B,8) transpose, then slice the two heads by column.
    out_t = out[:, :B].T
    return out_t[:, 0:4], out_t[:, 4:8]


def init_params(key):
    """Deterministic params in torch layouts: Linear weight is (out, in)."""
    k1, k2, k3, k4, k5, k6 = jax.random.split(key, 6)
    w1 = jax.random.normal(k1, (2, 3), jnp.float32) * 0.5     # Linear(3, 2)
    b1 = jax.random.normal(k2, (2,), jnp.float32) * 0.1
    g = jnp.ones((2,), jnp.float32)                           # LayerNorm(2)
    beta = jnp.zeros((2,), jnp.float32)
    wh1 = jax.random.normal(k3, (4, 2), jnp.float32) * 0.5    # Linear(2, 4)
    bh1 = jax.random.normal(k4, (4,), jnp.float32) * 0.1
    wh2 = jax.random.normal(k5, (4, 2), jnp.float32) * 0.5    # Linear(2, 4)
    bh2 = jax.random.normal(k6, (4,), jnp.float32) * 0.1
    return (w1, b1, g, beta, wh1, bh1, wh2, bh2)


def reference_forward(x, params):
    """Pure-JAX reference mirroring the PyTorch module."""
    (w1, b1, g, beta, wh1, bh1, wh2, bh2) = params
    h = x @ w1.T + b1
    mu = jnp.mean(h, axis=-1, keepdims=True)
    var = jnp.mean((h - mu) ** 2, axis=-1, keepdims=True)
    feat = (h - mu) * jax.lax.rsqrt(var + EPS) * g + beta
    return feat @ wh1.T + bh1, feat @ wh2.T + bh2


if __name__ == "__main__":
    key = jax.random.PRNGKey(0)
    kx, kp = jax.random.split(key)

    B = 8
    x = jax.random.normal(kx, (B, 3), jnp.float32)
    params = init_params(kp)

    out1, out2 = multi_head_test_net(x, params)
    jax.block_until_ready((out1, out2))

    ref1, ref2 = reference_forward(x, params)
    assert out1.shape == (B, 4) and out2.shape == (B, 4)
    assert jnp.allclose(out1, ref1, atol=1e-5, rtol=1e-5)
    assert jnp.allclose(out2, ref2, atol=1e-5, rtol=1e-5)

    print("KERNEL_OK")
</pallas_src>

<mosaic_0001>
module attributes {stable_mosaic.version = 11 : i64} {
  func.func @_mhn_kernel(%arg0: i32, %arg1: memref<3x1024xf32, #tpu.memory_space<vmem>>, %arg2: memref<4xf32, #tpu.memory_space<smem>>, %arg3: memref<8x1xf32, #tpu.memory_space<vmem>>, %arg4: memref<8x1xf32, #tpu.memory_space<vmem>>, %arg5: memref<8x1024xf32, #tpu.memory_space<vmem>>) attributes {dimension_semantics = [#tpu.dimension_semantics<parallel>], iteration_bounds = array<i64: 1>, scalar_prefetch = 0 : i64, scratch_operands = 0 : i64, tpu.core_type = #tpu.core_type<tc>, window_params = [{transform_indices = @transform_0, window_bounds = array<i64: 3, 1024>}, {transform_indices = @transform_1, window_bounds = array<i64: 4>}, {pipeline_mode = #tpu.pipeline_mode<synchronous>, transform_indices = @transform_2, window_bounds = array<i64: 8, 1>}, {pipeline_mode = #tpu.pipeline_mode<synchronous>, transform_indices = @transform_3, window_bounds = array<i64: 8, 1>}, {transform_indices = @transform_4, window_bounds = array<i64: 8, 1024>}]} {
    %c0 = arith.constant 0 : index
    %c0_0 = arith.constant 0 : index
    %0 = vector.load %arg1[%c0, %c0_0] : memref<3x1024xf32, #tpu.memory_space<vmem>>, vector<3x1024xf32>
    %c0_1 = arith.constant 0 : index
    %1 = memref.load %arg2[%c0_1] : memref<4xf32, #tpu.memory_space<smem>>
    %2 = vector.extract_strided_slice %0 {offsets = [0, 0], sizes = [1, 1024], strides = [1, 1]} : vector<3x1024xf32> to vector<1x1024xf32>
    %3 = vector.broadcast %1 : f32 to vector<1x1024xf32>
    %4 = arith.mulf %3, %2 : vector<1x1024xf32>
    %c1 = arith.constant 1 : index
    %5 = memref.load %arg2[%c1] : memref<4xf32, #tpu.memory_space<smem>>
    %6 = vector.extract_strided_slice %0 {offsets = [1, 0], sizes = [1, 1024], strides = [1, 1]} : vector<3x1024xf32> to vector<1x1024xf32>
    %7 = vector.broadcast %5 : f32 to vector<1x1024xf32>
    %8 = arith.mulf %7, %6 : vector<1x1024xf32>
    %9 = arith.addf %4, %8 : vector<1x1024xf32>
    %c2 = arith.constant 2 : index
    %10 = memref.load %arg2[%c2] : memref<4xf32, #tpu.memory_space<smem>>
    %11 = vector.extract_strided_slice %0 {offsets = [2, 0], sizes = [1, 1024], strides = [1, 1]} : vector<3x1024xf32> to vector<1x1024xf32>
    %12 = vector.broadcast %10 : f32 to vector<1x1024xf32>
    %13 = arith.mulf %12, %11 : vector<1x1024xf32>
    %14 = arith.addf %9, %13 : vector<1x1024xf32>
    %c3 = arith.constant 3 : index
    %15 = memref.load %arg2[%c3] : memref<4xf32, #tpu.memory_space<smem>>
    %16 = vector.broadcast %15 : f32 to vector<1x1024xf32>
    %17 = arith.addf %14, %16 : vector<1x1024xf32>
    %18 = arith.mulf %17, %17 : vector<1x1024xf32>
    %cst = arith.constant 9.99999974E-6 : f32
    %19 = vector.broadcast %cst : f32 to vector<1x1024xf32>
    %20 = arith.addf %18, %19 : vector<1x1024xf32>
    %21 = math.rsqrt %20 : vector<1x1024xf32>
    %22 = arith.mulf %17, %21 : vector<1x1024xf32>
    %c0_2 = arith.constant 0 : index
    %c0_3 = arith.constant 0 : index
    %23 = vector.load %arg3[%c0_2, %c0_3] : memref<8x1xf32, #tpu.memory_space<vmem>>, vector<8x1xf32>
    %24 = vector.broadcast %23 : vector<8x1xf32> to vector<8x1024xf32>
    %25 = vector.broadcast %22 : vector<1x1024xf32> to vector<8x1024xf32>
    %26 = arith.mulf %24, %25 : vector<8x1024xf32>
    %c0_4 = arith.constant 0 : index
    %c0_5 = arith.constant 0 : index
    %27 = vector.load %arg4[%c0_4, %c0_5] : memref<8x1xf32, #tpu.memory_space<vmem>>, vector<8x1xf32>
    %28 = vector.broadcast %27 : vector<8x1xf32> to vector<8x1024xf32>
    %29 = arith.addf %26, %28 : vector<8x1024xf32>
    %c0_6 = arith.constant 0 : index
    %c0_7 = arith.constant 0 : index
    %30 = vector.load %arg5[%c0_6, %c0_7] : memref<8x1024xf32, #tpu.memory_space<vmem>>, vector<8x1024xf32>
    tpu.vector_store %arg5[%c0_6, %c0_7], %29 {strides = array<i32>} : memref<8x1024xf32, #tpu.memory_space<vmem>>, vector<8x1024xf32>,
    return
  }
  func.func @transform_0(%arg0: i32) -> (i32, i32) {
    %c0_i32 = arith.constant 0 : i32
    %c0_i32_0 = arith.constant 0 : i32
    return %c0_i32, %arg0 : i32, i32
  }
  func.func @transform_1(%arg0: i32) -> i32 {
    %c0_i32 = arith.constant 0 : i32
    %c0_i32_0 = arith.constant 0 : i32
    return %c0_i32 : i32
  }
  func.func @transform_2(%arg0: i32) -> (i32, i32) {
    %c0_i32 = arith.constant 0 : i32
    %c0_i32_0 = arith.constant 0 : i32
    %c0_i32_1 = arith.constant 0 : i32
    return %c0_i32, %c0_i32_0 : i32, i32
  }
  func.func @transform_3(%arg0: i32) -> (i32, i32) {
    %c0_i32 = arith.constant 0 : i32
    %c0_i32_0 = arith.constant 0 : i32
    %c0_i32_1 = arith.constant 0 : i32
    return %c0_i32, %c0_i32_0 : i32, i32
  }
  func.func @transform_4(%arg0: i32) -> (i32, i32) {
    %c0_i32 = arith.constant 0 : i32
    %c0_i32_0 = arith.constant 0 : i32
    return %c0_i32, %arg0 : i32, i32
  }
}

</mosaic_0001>

<bundles_post_ra>
// kernel: tpu_custom_call.1
= control target key start
LH: loop header
LB: loop body
LE: loop exit
PB: predicated region body
PF: predicated region fallthrough
CT: control target
= control target key end

     0   :  { %9 = vsyncpa [#allocation3], 0  ;;  %s403_s0 = inlined_call_operand.hbm [shape: f32[3,1024], index: 0, kind: input, shape index: {}]   ;;  %s404_s1 = inlined_call_operand.vmem [shape: f32[4], index: 1, kind: input, shape index: {}]   ;;  %s405_s2 = inlined_call_operand.vmem [shape: f32[8,1], index: 2, kind: input, shape index: {}]   ;;  %s406_s3 = inlined_call_operand.vmem [shape: f32[8,1], index: 3, kind: input, shape index: {}]   ;;  %s407_s4 = inlined_call_operand.hbm [shape: f32[8,1024], index: 4, kind: output, shape index: {}]  }
   0x1   :  { %10 = vsyncpa [#allocation5], 0 }
   0x2   :  { %11 = vsyncpa [#allocation4], 0  ;;  %s28_s17 = sshll.u32 %s404_s1, 4  ;;  %s341_s18 = smov [#allocation2]   ;;  %s29_s17 = int_to_ptr.vmem [resolvable:$true] %s28_s17 }
   0x3   :  { %s18_s19 = sshll.u32 %s341_s18, 4  ;;  %s279_s22 = scalar_lea.hbm %s403_s0, 512  ;;  %s19_s19 = int_to_ptr.vmem [resolvable:$true] %s18_s19 }
   0x4   :  { %p280_p0 = scmp.ne.s32.totalorder %s403_s0, %s279_s22  ;;  %p283_p1 = scmp.lt.u32.totalorder %s279_s22, %s403_s0 }
   0x6   :  { %p285_p2 = pnand %p283_p1, %p280_p0 }
   0x8   :  { %288 = shalt.err (!%p285_p2)
}
   0x9   :  { %s289_s27 = scalar_lea.vmem %s19_s19, 512  ;;  %p294_p4 = scmp.lt.s32.totalorder %s19_s19, %s19_s19 }
   0xa   :  { %p290_p3 = scmp.ne.s32.totalorder %s19_s19, %s289_s27  ;;  %p295_p5 = scmp.lt.s32.totalorder %s289_s27, %s289_s27 }
   0xc   :  { %p296_p6 = por %p295_p5, %p294_p4 }
   0xe   :  { %p297_p7 = pnand %p296_p6, %p290_p3 }
  0x10   :  { %300 = shalt.err (!%p297_p7)
}
  0x11   :  { %21 = dma.hbm_to_vmem [thread:$0]  %s403_s0, 512, %s19_s19, [#allocation3]  }
  0x12   :  { %s301_s29 = scalar_lea.vmem %s29_s17, 16  ;;  %p306_p9 = scmp.lt.s32.totalorder %s29_s17, %s29_s17 }
  0x13   :  { %p302_p8 = scmp.ne.s32.totalorder %s29_s17, %s301_s29  ;;  %p307_p10 = scmp.lt.s32.totalorder %s301_s29, %s301_s29 }
  0x15   :  { %p308_p11 = por %p307_p10, %p306_p9 }
  0x17   :  { %p309_p12 = pnand %p308_p11, %p302_p8 }
  0x19   :  { %312 = shalt.err (!%p309_p12)
}
  0x1a   :  { %s342_s30 = smov [#allocation6]  }
  0x1b   :  { %31 = dma.vmem_to_smem %s29_s17, 16, %s342_s30, [#allocation5]  }
  0x1c   :  { %335 = dma.done.wait [#allocation3], 512  }
  0x1d   :  { %336 = vsyncadd [#allocation3], 4294966784 }
  0x1e   :  { %337 = dma.done.wait [#allocation5], 16  }
  0x1f   :  { %338 = vsyncadd [#allocation5], 4294967280 }
  0x20   :  { %42 = sfence }
  0x21   :  { %v127_v0 = vld [vmem:[%s405_s2] sm:$0xff]  ;;  %v343_v1 = vmov 0   ;;  %s255_s8 = sld [smem:[#allocation6 + $0x1]]  ;;  %s47_s9 = sld [smem:[#allocation6]]  ;;  %v44_v5 = vld [vmem:[#allocation2 + $0x8] sm:$0x77]  ;;  %v137_v51 = vlaneseq }
  0x22   :  { %270 = vset.pattern.permute.xlu0 %v343_v1  ;;  %v217_v2 = vld [vmem:[%s406_s3] sm:$0xff]  ;;  %s260_s10 = sld [smem:[#allocation6 + $0x2]]  ;;  %v45_v6 = vld [vmem:[#allocation2 + $0x10] sm:$0x77]  ;;  %v46_v7 = vld [vmem:[#allocation2 + $0x18] sm:$0x77] }
  0x23   :  { %130 = vperm.xlu0 %270, %v127_v0   ;;  %v43_v3 = vld [vmem:[#allocation2] sm:$0x77]  ;;  %s265_s2 = sld [smem:[#allocation6 + $0x3]]  ;;  %v138_v54 = vshrl.u32 %v137_v51, 7  ;;  %s344_s3 = smov [#allocation7]  }
  0x24   :  { %s245_s11 = sshll.u32 %s344_s3, 4  ;;  %s246_s11 = int_to_ptr.vmem [resolvable:$true] %s245_s11 }
  0x25   :  { %v139_v57 = vsub.s32 0, %v138_v54  ;;  %v143_v58 = vsub.s32 4, %v138_v54  ;;  %s313_s12 = scalar_lea.vmem %s246_s11, 1024  ;;  %p318_p0 = scmp.lt.s32.totalorder %s246_s11, %s246_s11 }
  0x26   :  { %p314_p13 = scmp.ne.s32.totalorder %s246_s11, %s313_s12  ;;  %p319_p1 = scmp.lt.s32.totalorder %s313_s12, %s313_s12 }
  0x27   :  { %220 = vperm.xlu0 %270, %v217_v2   ;;  %v54_v4 = vstv %s255_s8  ;;  %v48_v9 = vstv %s47_s9 }
  0x28   :  { %v55_v8 = vmul.f32 %v54_v4, %v43_v3  ;;  %v56_v10 = vmul.f32 %v54_v4, %v44_v5  ;;  %v80_v11 = vstv %s260_s10  ;;  %v57_v12 = vmul.f32 %v54_v4, %v45_v6  ;;  %p320_p2 = por %p319_p1, %p318_p0 }
  0x29   :  { %v58_v13 = vmul.f32 %v54_v4, %v46_v7  ;;  %v49_v14 = vmul.f32 %v48_v9, %v43_v3  ;;  %v81_v16 = vmul.f32 %v80_v11, %v43_v3  ;;  %v50_v17 = vmul.f32 %v48_v9, %v44_v5 }
  0x2a   :  { %v256_v15 = vrot.slane %v55_v8, 9  ;;  %v257_v18 = vrot.slane %v56_v10, 9  ;;  %v82_v19 = vmul.f32 %v80_v11, %v44_v5  ;;  %v51_v20 = vmul.f32 %v48_v9, %v45_v6  ;;  %p321_p3 = pnand %p320_p2, %p314_p13 }
  0x2b   :  { %v258_v21 = vrot.slane %v57_v12, 9  ;;  %v83_v22 = vmul.f32 %v80_v11, %v45_v6  ;;  %v52_v23 = vmul.f32 %v48_v9, %v46_v7  ;;  %v259_v24 = vrot.slane %v58_v13, 9 }
  0x2c   :  { %v84_v25 = vmul.f32 %v80_v11, %v46_v7  ;;  %v75_v26 = vadd.f32 %v256_v15, %v49_v14  ;;  %v261_v27 = vrot.slane %v81_v16, 10  ;;  %v76_v28 = vadd.f32 %v257_v18, %v50_v17 }
  0x2d   :  { %v262_v29 = vrot.slane %v82_v19, 10  ;;  %v77_v30 = vadd.f32 %v258_v21, %v51_v20  ;;  %v263_v31 = vrot.slane %v83_v22, 10  ;;  %v78_v32 = vadd.f32 %v259_v24, %v52_v23 }
  0x2e   :  { %v264_v33 = vrot.slane %v84_v25, 10  ;;  %v101_v34 = vadd.f32 %v261_v27, %v75_v26  ;;  %v106_v36 = vstv %s265_s2 }
  0x2f   :  { %v102_v35 = vadd.f32 %v262_v29, %v76_v28  ;;  %v103_v37 = vadd.f32 %v263_v31, %v77_v30 }
  0x30   :  { %v104_v38 = vadd.f32 %v264_v33, %v78_v32  ;;  %v107_v39 = vadd.f32 %v106_v36, %v101_v34 }
  0x31   :  { %v108_v40 = vadd.f32 %v106_v36, %v102_v35  ;;  %v109_v41 = vadd.f32 %v106_v36, %v103_v37 }
  0x32   :  { %v110_v42 = vadd.f32 %v106_v36, %v104_v38  ;;  %v111_v43 = vmul.f32 %v107_v39, %v107_v39 }
  0x33   :  { %v112_v44 = vmul.f32 %v108_v40, %v108_v40  ;;  %v113_v45 = vmul.f32 %v109_v41, %v109_v41 }
  0x34   :  { %v114_v46 = vmul.f32 %v110_v42, %v110_v42  ;;  %v115_v47 = vadd.f32 1e-05, %v111_v43 }
  0x35   :  { %v116_v48 = vadd.f32 1e-05, %v112_v44  ;;  %v117_v49 = vadd.f32 1e-05, %v113_v45 }
  0x36   :  { %v118_v50 = vadd.f32 1e-05, %v114_v46  ;;  %271 = vrsqrt.f32 %v115_v47 }
  0x37   :  { %273 = vrsqrt.f32 %v116_v48 }
  0x38   :  { %275 = vrsqrt.f32 %v117_v49 }
  0x39   :  { %277 = vrsqrt.f32 %v118_v50 }
  0x40   :  { %v272_v52 = vpop.eup %271 }
  0x41   :  { %v274_v53 = vpop.eup %273  ;;  %v123_v59 = vmul.f32 %v272_v52, %v107_v39 }
  0x42   :  { %v276_v55 = vpop.eup %275  ;;  %v124_v60 = vmul.f32 %v274_v53, %v108_v40 }
  0x43   :  { %v278_v56 = vpop.eup %277  ;;  %v125_v61 = vmul.f32 %v276_v55, %v109_v41  ;;  %v140_v63 = vrot.slane %v123_v59, %v139_v57  ;;  %v144_v0 = vrot.slane %v123_v59, %v143_v58 }
  0x44   :  { %v126_v62 = vmul.f32 %v278_v56, %v110_v42  ;;  %v148_v1 = vrot.slane %v124_v60, %v139_v57  ;;  %v152_v2 = vrot.slane %v124_v60, %v143_v58 }
  0x45   :  { %v156_v3 = vrot.slane %v125_v61, %v139_v57  ;;  %v160_v4 = vrot.slane %v125_v61, %v143_v58  ;;  %v180_v7 = vrot.slane %v140_v63, %v139_v57  ;;  %v184_v8 = vrot.slane %v144_v0, %v139_v57 }
  0x46   :  { %v164_v5 = vrot.slane %v126_v62, %v139_v57  ;;  %v168_v6 = vrot.slane %v126_v62, %v143_v58  ;;  %v188_v9 = vrot.slane %v148_v1, %v139_v57  ;;  %v192_v10 = vrot.slane %v152_v2, %v139_v57 }
  0x47   :  { %v196_v12 = vrot.slane %v156_v3, %v139_v57  ;;  %v200_v13 = vrot.slane %v160_v4, %v139_v57 }
  0x48   :  { %v204_v14 = vrot.slane %v164_v5, %v139_v57  ;;  %v208_v15 = vrot.slane %v168_v6, %v139_v57 }
  0xa2   :  { %v131_v11 = vpop.permute.xlu0 %130 }
  0xa3   :  { %v209_v16 = vmul.f32 %v180_v7, %v131_v11  ;;  %v210_v17 = vmul.f32 %v184_v8, %v131_v11  ;;  %v211_v18 = vmul.f32 %v188_v9, %v131_v11  ;;  %v212_v19 = vmul.f32 %v192_v10, %v131_v11 }
  0xa4   :  { %v213_v21 = vmul.f32 %v196_v12, %v131_v11  ;;  %v214_v22 = vmul.f32 %v200_v13, %v131_v11  ;;  %v215_v23 = vmul.f32 %v204_v14, %v131_v11  ;;  %v216_v24 = vmul.f32 %v208_v15, %v131_v11 }
  0xa6   :  { %v221_v20 = vpop.permute.xlu0 %220 }
  0xa7   :  { %v223_v25 = vadd.f32 %v221_v20, %v209_v16  ;;  %v224_v26 = vadd.f32 %v221_v20, %v210_v17  ;;  %v225_v27 = vadd.f32 %v221_v20, %v211_v18  ;;  %v226_v28 = vadd.f32 %v221_v20, %v212_v19 }
  0xa8   :  { %v227_v29 = vadd.f32 %v221_v20, %v213_v21  ;;  %v228_v30 = vadd.f32 %v221_v20, %v214_v22  ;;  %v229_v31 = vadd.f32 %v221_v20, %v215_v23  ;;  %v230_v32 = vadd.f32 %v221_v20, %v216_v24 }
  0xa9   :  { %231 = vst [vmem:[#allocation7] sm:$0xff] %v223_v25  ;;  %232 = vst [vmem:[#allocation7 + $0x8] sm:$0xff] %v224_v26 }
  0xaa   :  { %233 = vst [vmem:[#allocation7 + $0x10] sm:$0xff] %v225_v27  ;;  %234 = vst [vmem:[#allocation7 + $0x18] sm:$0xff] %v226_v28 }
  0xab   :  { %235 = vst [vmem:[#allocation7 + $0x20] sm:$0xff] %v227_v29  ;;  %236 = vst [vmem:[#allocation7 + $0x28] sm:$0xff] %v228_v30 }
  0xac   :  { %237 = vst [vmem:[#allocation7 + $0x30] sm:$0xff] %v229_v31  ;;  %238 = vst [vmem:[#allocation7 + $0x38] sm:$0xff] %v230_v32 }
  0xad   :  { %324 = shalt.err (!%p321_p3)
}
  0xae   :  { %s325_s15 = scalar_lea.hbm %s407_s4, 1024 }
  0xaf   :  { %p326_p4 = scmp.ne.s32.totalorder %s407_s4, %s325_s15  ;;  %p329_p5 = scmp.lt.u32.totalorder %s325_s15, %s407_s4 }
  0xb1   :  { %p331_p6 = pnand %p329_p5, %p326_p4 }
  0xb3   :  { %334 = shalt.err (!%p331_p6)
}
  0xb4   :  { %248 = dma.vmem_to_hbm [thread:$0]  %s246_s11, 1024, %s407_s4, [#allocation4]  }
  0xb5   :  { %339 = dma.done.wait [#allocation4], 1024  }
  0xb6   :  { %340 = vsyncadd [#allocation4], 4294966272 }
  0xb7   :  { %252 = vsyncpa [#allocation3], 1 }
  0xb8   :  { %253 = vsyncpa [#allocation4], 1 }
  0xb9   :  { %254 = vsyncpa [#allocation5], 1 }

</bundles_post_ra>
